<compile_context>
chip_gen: v7x
topology: tpu7x:2x2x1
jax: 0.10.0
libtpu: 0.0.40
codegen_flags: <defaults>
</compile_context>

<pallas_src>
import functools

import jax
import jax.numpy as jnp
from jax.experimental import pallas as pl
from jax.experimental.pallas import tpu as pltpu

_TWO_PI_ISH = 2.0 * 3.14  # the PyTorch module really uses 3.14, not math.pi


# ----------------------------------------------------------------------------
# Kernels
# ----------------------------------------------------------------------------
def _pe_lanepack_kernel(*refs, embed_dim, input_dim):
    """Lane-dense path (128 % E == 0): output viewed as (rows, 128).

    Each 128-lane row packs `chunks = 128 // E` consecutive embedding rows of
    the row-major (B, T, E) output, so the final store is a full-lane vst.
    All gather work is VPU selects; no MXU, no int div/mod, no lane reshapes.
    """
    E = embed_dim
    chunks = 128 // E
    if input_dim == 1:
        pos_ref, freq_ref, phase_ref, out_ref = refs
        idx_ref = None
    else:
        pos_ref, idx_ref, freq_ref, phase_ref, out_ref = refs

    shape = out_ref.shape                                   # (block_rows, 128)
    lane = jax.lax.broadcasted_iota(jnp.int32, shape, 1)

    def expand(packed):
        # (block_rows, chunks) per-embedding-row scalars -> (block_rows, 128),
        # using `chunks` lane-range selects (pure VPU, no division).
        full = jnp.zeros(shape, packed.dtype)
        for j in range(chunks):
            in_chunk = jnp.logical_and(lane >= j * E, lane < (j + 1) * E)
            full = jnp.where(in_chunk, packed[:, j:j + 1], full)
        return full

    pos = expand(pos_ref[...])                              # (block_rows, 128) f32

    if input_dim == 1:
        # Module forces x to zeros: the lookup is row 0 of each table, which
        # the wrapper already tiled to 128 lanes; broadcasts in the final FMA.
        freq = freq_ref[...]                                # (1, 128)
        phase_raw = phase_ref[...]                          # (1, 128)
    else:
        idx_lane = expand(idx_ref[...])                     # (block_rows, 128) i32
        wf = freq_ref[...]                                  # (input_dim, 128)
        wp = phase_ref[...]
        freq = jnp.zeros(shape, jnp.float32)
        phase_raw = jnp.zeros(shape, jnp.float32)
        for k in range(input_dim):                          # static unroll; exact row select
            hit = idx_lane == k
            freq = jnp.where(hit, wf[k:k + 1, :], freq)
            phase_raw = jnp.where(hit, wp[k:k + 1, :], phase_raw)

    phases = _TWO_PI_ISH * jax.nn.sigmoid(phase_raw)        # EUP
    out_ref[...] = pos * freq + phases                      # full 128-lane store


def _pe_rowmajor_kernel(*refs, input_dim):
    """General path: output as (B*T, E) rows (E >= 128 or awkward E)."""
    if input_dim == 1:
        pos_ref, freq_ref, phase_ref, out_ref = refs
        idx_ref = None
    else:
        pos_ref, idx_ref, freq_ref, phase_ref, out_ref = refs

    pos = pos_ref[...]                                      # (block_n, 1) f32

    if input_dim == 1:
        freq = freq_ref[...]                                # (1, E)
        phase_raw = phase_ref[...]
    else:
        idx = idx_ref[...]                                  # (block_n, 1) i32
        wf = freq_ref[...]
        wp = phase_ref[...]
        shape = out_ref.shape
        freq = jnp.zeros(shape, jnp.float32)
        phase_raw = jnp.zeros(shape, jnp.float32)
        for k in range(input_dim):
            hit = idx == k                                  # (block_n, 1) broadcasts over E
            freq = jnp.where(hit, wf[k:k + 1, :], freq)
            phase_raw = jnp.where(hit, wp[k:k + 1, :], phase_raw)

    phases = _TWO_PI_ISH * jax.nn.sigmoid(phase_raw)
    out_ref[...] = pos * freq + phases


# ----------------------------------------------------------------------------
# Wrapper
# ----------------------------------------------------------------------------
def _pick_block_rows(rows, max_rows=512):
    """Largest sublane-friendly block that evenly divides `rows`.

    512 rows x 128 lanes x 4 B = 256 KiB per output block: big enough to
    amortise per-step grid overhead, small enough (double-buffered) for v7x's
    64 MiB VMEM / 32 MiB default scoped limit.
    """
    if rows <= max_rows:
        return rows
    for cand in (512, 256, 128, 64, 32, 16, 8):
        if cand <= max_rows and rows % cand == 0:
            return cand
    return rows  # ragged size: single full block (correct, rarely hit)


def position_embedding(x, freq_w, phase_w, *, input_dim, zero_phase=False):
    """Pallas TPU implementation of PositionEmbedding.forward.

    x: (B, T) int indices; freq_w/phase_w: (input_dim, E); returns (B, T, E) f32.
    """
    B, T = x.shape
    E = freq_w.shape[1]

    if zero_phase:
        # Static config flag: the module zeroes the whole output; skip the kernel.
        return jnp.zeros((B, T, E), dtype=jnp.float32)

    freq_w = freq_w.astype(jnp.float32)
    phase_w = phase_w.astype(jnp.float32)
    n = B * T
    # Per-embedding-row position t = row % T, computed once in the wrapper
    # (keeps vector integer div/mod out of the kernel).
    pos_rows = jnp.tile(jnp.arange(T, dtype=jnp.float32), B)          # (n,)

    params = pltpu.CompilerParams(dimension_semantics=("parallel",))
    lane_pack = (E < 128) and (128 % E == 0) and ((n * E) % 128 == 0)

    if lane_pack:
        # Lane-dense layout: the row-major (B, T, E) output viewed as (rows, 128).
        chunks = 128 // E
        rows = (n * E) // 128
        block_rows = _pick_block_rows(rows)
        grid = (rows // block_rows,)

        wf = jnp.tile(freq_w, (1, chunks))                             # (input_dim, 128)
        wp = jnp.tile(phase_w, (1, chunks))
        pos_packed = pos_rows.reshape(rows, chunks)

        table_spec = pl.BlockSpec((wf.shape[0], 128), lambda i: (0, 0))
        packed_spec = pl.BlockSpec((block_rows, chunks), lambda i: (i, 0))
        out_spec = pl.BlockSpec((block_rows, 128), lambda i: (i, 0))
        out_shape = jax.ShapeDtypeStruct((rows, 128), jnp.float32)
        kernel = functools.partial(_pe_lanepack_kernel,
                                   embed_dim=E, input_dim=input_dim)

        if input_dim == 1:
            out2d = pl.pallas_call(
                kernel, out_shape=out_shape, grid=grid,
                in_specs=[packed_spec, table_spec, table_spec],
                out_specs=out_spec, compiler_params=params,
            )(pos_packed, wf, wp)
        else:
            idx_packed = x.reshape(-1).astype(jnp.int32).reshape(rows, chunks)
            out2d = pl.pallas_call(
                kernel, out_shape=out_shape, grid=grid,
                in_specs=[packed_spec, packed_spec, table_spec, table_spec],
                out_specs=out_spec, compiler_params=params,
            )(pos_packed, idx_packed, wf, wp)
        return out2d.reshape(B, T, E)

    # General layout: (B*T, E) rows. E % 128 == 0 is already lane-dense here;
    # other E values take masked stores (unavoidable without lane repacking).
    block_n = _pick_block_rows(n)
    grid = (n // block_n,)
    pos_col = pos_rows.reshape(n, 1)
    table_spec = pl.BlockSpec((freq_w.shape[0], E), lambda i: (0, 0))
    col_spec = pl.BlockSpec((block_n, 1), lambda i: (i, 0))
    out_spec = pl.BlockSpec((block_n, E), lambda i: (i, 0))
    out_shape = jax.ShapeDtypeStruct((n, E), jnp.float32)
    kernel = functools.partial(_pe_rowmajor_kernel, input_dim=input_dim)

    if input_dim == 1:
        out2d = pl.pallas_call(
            kernel, out_shape=out_shape, grid=grid,
            in_specs=[col_spec, table_spec, table_spec],
            out_specs=out_spec, compiler_params=params,
        )(pos_col, freq_w, phase_w)
    else:
        # TODO(synk): at real vocabulary sizes, replace the unrolled VPU select
        # with a scalar-prefetch row gather (PrefetchScalarGridSpec + pl.Element).
        idx_col = x.reshape(n, 1).astype(jnp.int32)
        out2d = pl.pallas_call(
            kernel, out_shape=out_shape, grid=grid,
            in_specs=[col_spec, col_spec, table_spec, table_spec],
            out_specs=out_spec, compiler_params=params,
        )(pos_col, idx_col, freq_w, phase_w)
    return out2d.reshape(B, T, E)


# ----------------------------------------------------------------------------
# Pure-JAX reference (mirrors the PyTorch forward) and smoke test
# ----------------------------------------------------------------------------
def position_embedding_ref(x, freq_w, phase_w, *, input_dim, zero_phase=False):
    if input_dim == 1:
        x = jnp.zeros_like(x)
    phases = _TWO_PI_ISH * jax.nn.sigmoid(phase_w[x])                 # (B, T, E)
    T = x.shape[1]
    positions = jnp.arange(T, dtype=jnp.float32)[:, None]             # (T, 1)
    out = positions * freq_w[x] + phases
    if zero_phase:
        out = jnp.zeros_like(out)
    return out


if __name__ == "__main__":
    B, T, E = 2, 8, 32
    key = jax.random.PRNGKey(0)
    k1, k2, k3, kx = jax.random.split(key, 4)

    # frequency_inits = 1 / 10000**(arange(E)/E)  (mirrors __init__)
    freq_inits = 1.0 / jnp.power(
        10000.0, jnp.arange(E, dtype=jnp.float32) / float(E))

    # --- Case 1: module defaults (input_dim=1) -> lane-packed broadcast path --
    input_dim = 1
    freq_w = jnp.tile(freq_inits[None, :], (input_dim, 1))            # (1, E)
    phase_w = jax.random.uniform(k1, (input_dim, E), dtype=jnp.float32)
    x = jax.random.randint(kx, (B, T), 0, 1, dtype=jnp.int32)
    out = jax.block_until_ready(
        position_embedding(x, freq_w, phase_w, input_dim=input_dim))
    ref = position_embedding_ref(x, freq_w, phase_w, input_dim=input_dim)
    assert out.shape == (B, T, E)
    assert jnp.allclose(out, ref, atol=1e-5, rtol=1e-5)

    # --- Case 2: input_dim > 1 -> lane-packed VPU gather path -----------------
    input_dim = 4
    freq_w = jnp.tile(freq_inits[None, :], (input_dim, 1))            # (4, E)
    phase_w = jax.random.uniform(k2, (input_dim, E), dtype=jnp.float32)
    x = jax.random.randint(kx, (B, T), 0, input_dim, dtype=jnp.int32)
    out = jax.block_until_ready(
        position_embedding(x, freq_w, phase_w, input_dim=input_dim))
    ref = position_embedding_ref(x, freq_w, phase_w, input_dim=input_dim)
    assert out.shape == (B, T, E)
    assert jnp.allclose(out, ref, atol=1e-5, rtol=1e-5)

    # --- Case 3: zero_phase=True -> handled in the wrapper, no kernel ---------
    out = jax.block_until_ready(
        position_embedding(x, freq_w, phase_w, input_dim=input_dim,
                           zero_phase=True))
    assert jnp.allclose(out, jnp.zeros((B, T, E), jnp.float32))

    # --- Case 4: awkward embed_dim (128 % E != 0) -> row-major fallback path --
    B2, T2, E2, input_dim2 = 2, 6, 20, 3
    freq_inits2 = 1.0 / jnp.power(
        10000.0, jnp.arange(E2, dtype=jnp.float32) / float(E2))
    freq_w2 = jnp.tile(freq_inits2[None, :], (input_dim2, 1))
    phase_w2 = jax.random.uniform(k3, (input_dim2, E2), dtype=jnp.float32)
    x2 = jax.random.randint(kx, (B2, T2), 0, input_dim2, dtype=jnp.int32)
    out2 = jax.block_until_ready(
        position_embedding(x2, freq_w2, phase_w2, input_dim=input_dim2))
    ref2 = position_embedding_ref(x2, freq_w2, phase_w2, input_dim=input_dim2)
    assert out2.shape == (B2, T2, E2)
    assert jnp.allclose(out2, ref2, atol=1e-5, rtol=1e-5)

    print("KERNEL_OK")
</pallas_src>

<mosaic_0001>
module attributes {stable_mosaic.version = 11 : i64} {
  func.func @_pe_lanepack_kernel(%arg0: i32, %arg1: memref<4x4xf32, #tpu.memory_space<vmem>>, %arg2: memref<1x128xf32, #tpu.memory_space<vmem>>, %arg3: memref<1x128xf32, #tpu.memory_space<vmem>>, %arg4: memref<4x128xf32, #tpu.memory_space<vmem>>) attributes {dimension_semantics = [#tpu.dimension_semantics<parallel>], iteration_bounds = array<i64: 1>, scalar_prefetch = 0 : i64, scratch_operands = 0 : i64, tpu.core_type = #tpu.core_type<tc>, window_params = [{transform_indices = @transform_0, window_bounds = array<i64: 4, 4>}, {pipeline_mode = #tpu.pipeline_mode<synchronous>, transform_indices = @transform_1, window_bounds = array<i64: 1, 128>}, {pipeline_mode = #tpu.pipeline_mode<synchronous>, transform_indices = @transform_2, window_bounds = array<i64: 1, 128>}, {transform_indices = @transform_3, window_bounds = array<i64: 4, 128>}]} {
    %0 = tpu.iota {dimensions = array<i32: 1>} : vector<4x128xi32>
    %c0 = arith.constant 0 : index
    %c0_0 = arith.constant 0 : index
    %1 = vector.load %arg1[%c0, %c0_0] : memref<4x4xf32, #tpu.memory_space<vmem>>, vector<4x4xf32>
    %cst = arith.constant 0.000000e+00 : f32
    %2 = vector.broadcast %cst : f32 to vector<4x128xf32>
    %c0_i32 = arith.constant 0 : i32
    %3 = vector.broadcast %c0_i32 : i32 to vector<4x128xi32>
    %4 = arith.cmpi sge, %0, %3 : vector<4x128xi32>
    %c32_i32 = arith.constant 32 : i32
    %5 = vector.broadcast %c32_i32 : i32 to vector<4x128xi32>
    %6 = arith.cmpi slt, %0, %5 : vector<4x128xi32>
    %7 = arith.andi %4, %6 : vector<4x128xi1>
    %8 = vector.extract_strided_slice %1 {offsets = [0, 0], sizes = [4, 1], strides = [1, 1]} : vector<4x4xf32> to vector<4x1xf32>
    %9 = vector.shape_cast %8 : vector<4x1xf32> to vector<4x1xf32>
    %10 = vector.broadcast %9 : vector<4x1xf32> to vector<4x128xf32>
    %11 = arith.select %7, %10, %2 : vector<4x128xi1>, vector<4x128xf32>
    %c32_i32_1 = arith.constant 32 : i32
    %12 = vector.broadcast %c32_i32_1 : i32 to vector<4x128xi32>
    %13 = arith.cmpi sge, %0, %12 : vector<4x128xi32>
    %c64_i32 = arith.constant 64 : i32
    %14 = vector.broadcast %c64_i32 : i32 to vector<4x128xi32>
    %15 = arith.cmpi slt, %0, %14 : vector<4x128xi32>
    %16 = arith.andi %13, %15 : vector<4x128xi1>
    %17 = vector.extract_strided_slice %1 {offsets = [0, 1], sizes = [4, 1], strides = [1, 1]} : vector<4x4xf32> to vector<4x1xf32>
    %18 = vector.shape_cast %17 : vector<4x1xf32> to vector<4x1xf32>
    %19 = vector.broadcast %18 : vector<4x1xf32> to vector<4x128xf32>
    %20 = arith.select %16, %19, %11 : vector<4x128xi1>, vector<4x128xf32>
    %c64_i32_2 = arith.constant 64 : i32
    %21 = vector.broadcast %c64_i32_2 : i32 to vector<4x128xi32>
    %22 = arith.cmpi sge, %0, %21 : vector<4x128xi32>
    %c96_i32 = arith.constant 96 : i32
    %23 = vector.broadcast %c96_i32 : i32 to vector<4x128xi32>
    %24 = arith.cmpi slt, %0, %23 : vector<4x128xi32>
    %25 = arith.andi %22, %24 : vector<4x128xi1>
    %26 = vector.extract_strided_slice %1 {offsets = [0, 2], sizes = [4, 1], strides = [1, 1]} : vector<4x4xf32> to vector<4x1xf32>
    %27 = vector.shape_cast %26 : vector<4x1xf32> to vector<4x1xf32>
    %28 = vector.broadcast %27 : vector<4x1xf32> to vector<4x128xf32>
    %29 = arith.select %25, %28, %20 : vector<4x128xi1>, vector<4x128xf32>
    %c96_i32_3 = arith.constant 96 : i32
    %30 = vector.broadcast %c96_i32_3 : i32 to vector<4x128xi32>
    %31 = arith.cmpi sge, %0, %30 : vector<4x128xi32>
    %c128_i32 = arith.constant 128 : i32
    %32 = vector.broadcast %c128_i32 : i32 to vector<4x128xi32>
    %33 = arith.cmpi slt, %0, %32 : vector<4x128xi32>
    %34 = arith.andi %31, %33 : vector<4x128xi1>
    %35 = vector.extract_strided_slice %1 {offsets = [0, 3], sizes = [4, 1], strides = [1, 1]} : vector<4x4xf32> to vector<4x1xf32>
    %36 = vector.shape_cast %35 : vector<4x1xf32> to vector<4x1xf32>
    %37 = vector.broadcast %36 : vector<4x1xf32> to vector<4x128xf32>
    %38 = arith.select %34, %37, %29 : vector<4x128xi1>, vector<4x128xf32>
    %c0_4 = arith.constant 0 : index
    %c0_5 = arith.constant 0 : index
    %39 = vector.load %arg2[%c0_4, %c0_5] : memref<1x128xf32, #tpu.memory_space<vmem>>, vector<1x128xf32>
    %c0_6 = arith.constant 0 : index
    %c0_7 = arith.constant 0 : index
    %40 = vector.load %arg3[%c0_6, %c0_7] : memref<1x128xf32, #tpu.memory_space<vmem>>, vector<1x128xf32>
    %41 = arith.negf %40 : vector<1x128xf32>
    %42 = math.exp %41 : vector<1x128xf32>
    %cst_8 = arith.constant 1.000000e+00 : f32
    %43 = vector.broadcast %cst_8 : f32 to vector<1x128xf32>
    %44 = arith.addf %43, %42 : vector<1x128xf32>
    %45 = arith.divf %43, %44 : vector<1x128xf32>
    %cst_9 = arith.constant 6.280000e+00 : f32
    %46 = vector.broadcast %cst_9 : f32 to vector<1x128xf32>
    %47 = arith.mulf %46, %45 : vector<1x128xf32>
    %48 = vector.broadcast %39 : vector<1x128xf32> to vector<4x128xf32>
    %49 = arith.mulf %38, %48 : vector<4x128xf32>
    %50 = vector.broadcast %47 : vector<1x128xf32> to vector<4x128xf32>
    %51 = arith.addf %49, %50 : vector<4x128xf32>
    %c0_10 = arith.constant 0 : index
    %c0_11 = arith.constant 0 : index
    %52 = vector.load %arg4[%c0_10, %c0_11] : memref<4x128xf32, #tpu.memory_space<vmem>>, vector<4x128xf32>
    tpu.vector_store %arg4[%c0_10, %c0_11], %51 {strides = array<i32>} : memref<4x128xf32, #tpu.memory_space<vmem>>, vector<4x128xf32>,
    return
  }
  func.func @transform_0(%arg0: i32) -> (i32, i32) {
    %c0_i32 = arith.constant 0 : i32
    %c0_i32_0 = arith.constant 0 : i32
    return %arg0, %c0_i32 : i32, i32
  }
  func.func @transform_1(%arg0: i32) -> (i32, i32) {
    %c0_i32 = arith.constant 0 : i32
    %c0_i32_0 = arith.constant 0 : i32
    %c0_i32_1 = arith.constant 0 : i32
    return %c0_i32, %c0_i32_0 : i32, i32
  }
  func.func @transform_2(%arg0: i32) -> (i32, i32) {
    %c0_i32 = arith.constant 0 : i32
    %c0_i32_0 = arith.constant 0 : i32
    %c0_i32_1 = arith.constant 0 : i32
    return %c0_i32, %c0_i32_0 : i32, i32
  }
  func.func @transform_3(%arg0: i32) -> (i32, i32) {
    %c0_i32 = arith.constant 0 : i32
    %c0_i32_0 = arith.constant 0 : i32
    return %arg0, %c0_i32 : i32, i32
  }
}

</mosaic_0001>

<bundles_post_ra>
// kernel: tpu_custom_call.1
= control target key start
LH: loop header
LB: loop body
LE: loop exit
PB: predicated region body
PF: predicated region fallthrough
CT: control target
= control target key end

     0   :  { %8 = vsyncpa [#allocation3], 0  ;;  %s223_s0 = inlined_call_operand.hbm [shape: f32[4,4], index: 0, kind: input, shape index: {}]   ;;  %s224_s1 = inlined_call_operand.vmem [shape: f32[1,128], index: 1, kind: input, shape index: {}]   ;;  %s225_s2 = inlined_call_operand.vmem [shape: f32[1,128], index: 2, kind: input, shape index: {}]   ;;  %s226_s3 = inlined_call_operand.hbm [shape: f32[4,128], index: 3, kind: output, shape index: {}]  }
   0x1   :  { %9 = vsyncpa [#allocation4], 0  ;;  %s167_s12 = smov [#allocation2]   ;;  %s119_s16 = scalar_lea.hbm %s223_s0, 64 }
   0x2   :  { %s16_s13 = sshll.u32 %s167_s12, 4  ;;  %p120_p0 = scmp.ne.s32.totalorder %s223_s0, %s119_s16  ;;  %s17_s13 = int_to_ptr.vmem [resolvable:$true] %s16_s13 }
   0x3   :  { %p123_p1 = scmp.lt.u32.totalorder %s119_s16, %s223_s0 }
   0x5   :  { %p125_p2 = pnand %p123_p1, %p120_p0 }
   0x7   :  { %128 = shalt.err (!%p125_p2)
}
   0x8   :  { %s129_s21 = scalar_lea.vmem %s17_s13, 64  ;;  %p134_p4 = scmp.lt.s32.totalorder %s17_s13, %s17_s13 }
   0x9   :  { %p130_p3 = scmp.ne.s32.totalorder %s17_s13, %s129_s21  ;;  %p135_p5 = scmp.lt.s32.totalorder %s129_s21, %s129_s21 }
   0xb   :  { %p136_p6 = por %p135_p5, %p134_p4 }
   0xd   :  { %p137_p7 = pnand %p136_p6, %p130_p3 }
   0xf   :  { %140 = shalt.err (!%p137_p7)
}
  0x10   :  { %19 = dma.hbm_to_vmem [thread:$0]  %s223_s0, 64, %s17_s13, [#allocation3]  }
  0x11   :  { %163 = dma.done.wait [#allocation3], 64  }
  0x12   :  { %164 = vsyncadd [#allocation3], 4294967232  ;;  %v168_v0 = vmov 0   ;;  %v169_v1 = vmov 2   ;;  %v29_v2 = vld [vmem:[#allocation2] sm:$0xf]  ;;  %v27_v9 = vlaneseq }
  0x13   :  { %110 = vset.pattern.permute.xlu0 %v168_v0  ;;  %112 = vset.pattern.permute.xlu1 %v169_v1  ;;  %v170_v3 = vmov 1   ;;  %v171_v4 = vmov 3   ;;  %v64_v5 = vld [vmem:[%s225_s2] sm:$0x1]  ;;  %s172_s26 = smov [#allocation5]  }
  0x14   :  { %35 = vperm.xlu0 %110, %v29_v2   ;;  %51 = vperm.xlu1 %112, %v29_v2   ;;  %v102_v6 = vmul.f32 -1.442695, %v64_v5  ;;  %v28_v10 = vand.u32 127, %v27_v9  ;;  %v81_v11 = vshrl.u32 %v27_v9, 7  ;;  %v103_v21 = vld [vmem:[%s224_s1] ss:$0 sm:$0xff] }
  0x15   :  { %s93_s27 = sshll.u32 %s172_s26, 4  ;;  %s94_s27 = int_to_ptr.vmem [resolvable:$true] %s93_s27 }
  0x16   :  { %115 = vpow2.f32 %v102_v6  ;;  %vm39_vm0 = vcmp.ge.s32.totalorder %v28_v10, 32  ;;  %vm40_vm1 = vcmp.lt.s32.totalorder %v28_v10, 64  ;;  %vm47_vm2 = vcmp.ge.s32.totalorder %v28_v10, 64  ;;  %s141_s28 = scalar_lea.vmem %s94_s27, 64  ;;  %p146_p9 = scmp.lt.s32.totalorder %s94_s27, %s94_s27 }
  0x17   :  { %vm48_vm3 = vcmp.lt.s32.totalorder %v28_v10, 96  ;;  %vm31_vm4 = vcmp.lt.s32.totalorder %v28_v10, 32  ;;  %vm41_vm5 = vmand %vm39_vm0, %vm40_vm1  ;;  %v82_v16 = vsub.s32 0, %v81_v11  ;;  %vm55_vm7 = vcmp.ge.s32.totalorder %v28_v10, 96  ;;  %p142_p8 = scmp.ne.s32.totalorder %s94_s27, %s141_s28  ;;  %p147_p10 = scmp.lt.s32.totalorder %s141_s28, %s141_s28 }
  0x18   :  { %111 = vset.pattern.permute.xlu0 %v170_v3  ;;  %113 = vset.pattern.permute.xlu1 %v171_v4  ;;  %vm49_vm6 = vmand %vm47_vm2, %vm48_vm3 }
  0x19   :  { %43 = vperm.xlu0 %111, %v29_v2   ;;  %59 = vperm.xlu1 %113, %v29_v2   ;;  %p148_p11 = por %p147_p10, %p146_p9 }
  0x1b   :  { %p149_p12 = pnand %p148_p11, %p142_p8 }
  0x1d   :  { %114 = vset.pattern.permute.xlu0 %v171_v4 }
  0x20   :  { %v116_v7 = vpop.eup %115 }
  0x21   :  { %v68_v8 = vadd.f32 1.0, %v116_v7 }
  0x23   :  { %117 = vrcp.f32 %v68_v8 }
  0x2d   :  { %v118_v12 = vpop.eup %117 }
  0x2e   :  { %v71_v15 = vmul.f32 6.28, %v118_v12 }
  0x30   :  { %v83_v23 = vrot.slane %v71_v15, %v82_v16 }
  0x93   :  { %v36_v13 = vpop.permute.xlu0 %35  ;;  %v52_v14 = vpop.permute.xlu1 %51 }
  0x94   :  { %v38_v17 = vsel %vm31_vm4, %v36_v13, 0.0 }
  0x98   :  { %v44_v18 = vpop.permute.xlu0 %43  ;;  %v60_v19 = vpop.permute.xlu1 %59 }
  0x99   :  { %v46_v20 = vsel %vm41_vm5, %v44_v18, %v38_v17 }
  0x9a   :  { %v54_v22 = vsel %vm49_vm6, %v52_v14, %v46_v20 }
  0x9b   :  { %v62_v24 = vsel %vm55_vm7, %v60_v19, %v54_v22 }
  0x9c   :  { %v78_v25 = vmul.f32 %v103_v21, %v62_v24 }
  0x9e   :  { %v85_v26 = vadd.f32 %v83_v23, %v78_v25 }
  0xa0   :  { %86 = vst [vmem:[#allocation5] sm:$0xf] %v85_v26 }
  0xa1   :  { %152 = shalt.err (!%p149_p12)
}
  0xa2   :  { %s153_s1 = scalar_lea.hbm %s226_s3, 64 }
  0xa3   :  { %p154_p13 = scmp.ne.s32.totalorder %s226_s3, %s153_s1  ;;  %p157_p0 = scmp.lt.u32.totalorder %s153_s1, %s226_s3 }
  0xa5   :  { %p159_p1 = pnand %p157_p0, %p154_p13 }
  0xa7   :  { %162 = shalt.err (!%p159_p1)
}
  0xa8   :  { %96 = dma.vmem_to_hbm [thread:$0]  %s94_s27, 64, %s226_s3, [#allocation4]  }
  0xa9   :  { %165 = dma.done.wait [#allocation4], 64  }
  0xaa   :  { %166 = vsyncadd [#allocation4], 4294967232 }
  0xab   :  { %100 = vsyncpa [#allocation3], 1 }
  0xac   :  { %101 = vsyncpa [#allocation4], 1 }

</bundles_post_ra>
